<compile_context>
chip_gen: v6e
topology: v6e:2x2x1
jax: 0.10.0
libtpu: 0.0.40
codegen_flags: <defaults>
</compile_context>

<pallas_src>
import functools
import math

import jax
import jax.numpy as jnp
from jax.experimental import pallas as pl
from jax.experimental.pallas import tpu as pltpu


def _round_up(x, m):
    return ((x + m - 1) // m) * m


def _cross_attn_kernel(n_total, scale, q_ref, kv_ref, o_ref, m_sc, l_sc, acc_sc):
    """Grid = (B, N_pad // TILE_N).

    q_ref  : (L, C)           latent query embeddings (same block every step)
    kv_ref : (1, C, TILE_N)   chunk of the flattened params, stored as K^T/V^T
    o_ref  : (1, L, C)        attention output for this batch element
    m/l/acc: online-softmax running max / denom / numerator (VMEM scratch)
    """
    n = pl.program_id(1)

    @pl.when(n == 0)
    def _():
        m_sc[...] = jnp.full_like(m_sc, -jnp.inf)
        l_sc[...] = jnp.zeros_like(l_sc)
        acc_sc[...] = jnp.zeros_like(acc_sc)

    q = q_ref[...].astype(jnp.float32)       # (L, C)
    kt = kv_ref[0].astype(jnp.float32)       # (C, TILE_N)  == K^T chunk
    L = q.shape[0]
    tile_n = kt.shape[1]

    # scores = (Q @ K^T) * scale ; K^T is already the stored layout -> no transpose.
    s = jnp.dot(q, kt, preferred_element_type=jnp.float32) * scale   # (L, TILE_N)

    # Mask padded key positions (N_total is static).
    col = n * tile_n + jax.lax.broadcasted_iota(jnp.int32, (L, tile_n), 1)
    s = jnp.where(col < n_total, s, -1e30)

    m_new = jnp.maximum(m_sc[...], s.max(axis=-1, keepdims=True))    # (L, 1)
    alpha = jnp.exp(m_sc[...] - m_new)
    p = jnp.exp(s - m_new)                                           # (L, TILE_N)

    l_sc[...] = alpha * l_sc[...] + p.sum(axis=-1, keepdims=True)
    # P @ V with V stored transposed as (C, TILE_N): contract the TILE_N axes.
    pv = jax.lax.dot_general(p, kt, (((1,), (1,)), ((), ())),
                             preferred_element_type=jnp.float32)      # (L, C)
    acc_sc[...] = alpha * acc_sc[...] + pv
    m_sc[...] = m_new

    @pl.when(n == pl.num_programs(1) - 1)
    def _():
        o_ref[0] = (acc_sc[...] / l_sc[...]).astype(o_ref.dtype)


def cross_attn_encoder(embeddings, weights, biases, *, tile_n=512):
    """embeddings: (L, C); weights[i]: (B, C, n_out_i, n_in_i); biases[i]: (B, C, n_out_i).

    Returns (B, L, C) == F.scaled_dot_product_attention(embeddings, flat, flat)
    with flat = FlattenWeights(params).
    """
    B, C = weights[0].shape[:2]
    L = embeddings.shape[0]
    assert embeddings.shape[1] == C

    # --- FlattenWeights glue (pure layout, no data transform) -------------
    # torch.flatten(w, start_dim=2) is a reshape; the concat is on the LAST
    # axis so N_total lands on the lane axis.  transpose(1, 2) is fused into
    # the attention kernel instead of being materialized.
    # TODO(synk): for conv network specs, shape_wsfeat_symmetry's
    # "b c o i h w -> b (c h w) o i" rearrange would also be JAX-side glue here.
    flats = []
    for w, b in zip(weights, biases):
        flats.append(w.reshape(B, C, -1))
        flats.append(b)
    kv = jnp.concatenate(flats, axis=-1)                 # (B, C, N_total)
    n_total = kv.shape[-1]

    tile_n = min(tile_n, _round_up(n_total, 128))        # (8,128)-aligned chunks
    n_pad = _round_up(n_total, tile_n)
    if n_pad != n_total:
        kv = jnp.pad(kv, ((0, 0), (0, 0), (0, n_pad - n_total)))
    num_chunks = n_pad // tile_n

    scale = 1.0 / math.sqrt(C)                           # torch SDPA default scale
    kernel = functools.partial(_cross_attn_kernel, n_total, scale)

    return pl.pallas_call(
        kernel,
        out_shape=jax.ShapeDtypeStruct((B, L, C), embeddings.dtype),
        grid_spec=pltpu.PrefetchScalarGridSpec(
            num_scalar_prefetch=0,
            grid=(B, num_chunks),
            in_specs=[
                pl.BlockSpec((L, C), lambda b, n: (0, 0)),            # embeddings
                pl.BlockSpec((1, C, tile_n), lambda b, n: (b, 0, n)),  # K^T/V^T chunk
            ],
            out_specs=pl.BlockSpec((1, L, C), lambda b, n: (b, 0, 0)),
            scratch_shapes=[
                pltpu.VMEM((L, 1), jnp.float32),   # running max
                pltpu.VMEM((L, 1), jnp.float32),   # running denom
                pltpu.VMEM((L, C), jnp.float32),   # running numerator
            ],
        ),
        compiler_params=pltpu.CompilerParams(
            dimension_semantics=("parallel", "arbitrary")),
    )(embeddings, kv)


if __name__ == "__main__":
    key = jax.random.PRNGKey(0)

    # Small MLP network spec: layer0 maps 16 -> 8, layer1 maps 8 -> 8.
    # B = batch of input networks, C = feature channels, L = num_latents.
    B, C, L = 2, 8, 16
    layer_dims = [(8, 16), (8, 8)]   # (n_out_i, n_in_i)

    weights, biases = [], []
    for (n_out, n_in) in layer_dims:
        key, kw, kb = jax.random.split(key, 3)
        weights.append(jax.random.normal(kw, (B, C, n_out, n_in), jnp.float32))
        biases.append(jax.random.normal(kb, (B, C, n_out), jnp.float32))
    key, ke = jax.random.split(key)
    embeddings = jax.random.normal(ke, (L, C), jnp.float32)

    # tile_n=128 so the small example exercises the multi-chunk online-softmax path.
    out = jax.block_until_ready(
        cross_attn_encoder(embeddings, weights, biases, tile_n=128))

    # Pure-JAX reference of the torch forward.
    flat_parts = []
    for w, b in zip(weights, biases):
        flat_parts.append(jnp.swapaxes(w.reshape(B, C, -1), 1, 2))
        flat_parts.append(jnp.swapaxes(b, 1, 2))
    flat = jnp.concatenate(flat_parts, axis=1)                     # (B, N, C)
    scores = jnp.einsum('lc,bnc->bln', embeddings, flat) / math.sqrt(C)
    probs = jax.nn.softmax(scores, axis=-1)
    ref = jnp.einsum('bln,bnc->blc', probs, flat)                  # (B, L, C)

    assert out.shape == ref.shape, (out.shape, ref.shape)
    assert out.dtype == ref.dtype
    assert jnp.allclose(out, ref, rtol=1e-5, atol=1e-5), \
        float(jnp.max(jnp.abs(out - ref)))
    print("KERNEL_OK")
</pallas_src>

<mosaic_0001>
module attributes {stable_mosaic.version = 11 : i64} {
  func.func @_cross_attn_kernel(%arg0: i32, %arg1: i32, %arg2: memref<16x8xf32, #tpu.memory_space<vmem>>, %arg3: memref<1x8x128xf32, #tpu.memory_space<vmem>>, %arg4: memref<1x16x8xf32, #tpu.memory_space<vmem>>, %arg5: memref<16x1xf32, #tpu.memory_space<vmem>>, %arg6: memref<16x1xf32, #tpu.memory_space<vmem>>, %arg7: memref<16x8xf32, #tpu.memory_space<vmem>>) attributes {dimension_semantics = [#tpu.dimension_semantics<parallel>, #tpu.dimension_semantics<arbitrary>], iteration_bounds = array<i64: 2, 2>, scalar_prefetch = 0 : i64, scratch_operands = 3 : i64, tpu.core_type = #tpu.core_type<tc>, window_params = [{pipeline_mode = #tpu.pipeline_mode<synchronous>, transform_indices = @transform_0, window_bounds = array<i64: 16, 8>}, {transform_indices = @transform_1, window_bounds = array<i64: 1, 8, 128>}, {transform_indices = @transform_2, window_bounds = array<i64: 1, 16, 8>}]} {
    %c0_i32 = arith.constant 0 : i32
    %0 = arith.cmpi eq, %arg1, %c0_i32 : i32
    %1 = arith.extui %0 : i1 to i32
    %c0_i32_0 = arith.constant 0 : i32
    %2 = arith.cmpi ne, %1, %c0_i32_0 : i32
    scf.if %2 {
      %cst_25 = arith.constant 0xFF800000 : f32
      %43 = vector.broadcast %cst_25 : f32 to vector<16x1xf32>
      %c0_26 = arith.constant 0 : index
      %c0_27 = arith.constant 0 : index
      %44 = vector.load %arg5[%c0_26, %c0_27] : memref<16x1xf32, #tpu.memory_space<vmem>>, vector<16x1xf32>
      tpu.vector_store %arg5[%c0_26, %c0_27], %43 {strides = array<i32>} : memref<16x1xf32, #tpu.memory_space<vmem>>, vector<16x1xf32>,
      %cst_28 = arith.constant 0.000000e+00 : f32
      %45 = vector.broadcast %cst_28 : f32 to vector<16x1xf32>
      %c0_29 = arith.constant 0 : index
      %c0_30 = arith.constant 0 : index
      %46 = vector.load %arg6[%c0_29, %c0_30] : memref<16x1xf32, #tpu.memory_space<vmem>>, vector<16x1xf32>
      tpu.vector_store %arg6[%c0_29, %c0_30], %45 {strides = array<i32>} : memref<16x1xf32, #tpu.memory_space<vmem>>, vector<16x1xf32>,
      %cst_31 = arith.constant 0.000000e+00 : f32
      %47 = vector.broadcast %cst_31 : f32 to vector<16x8xf32>
      %c0_32 = arith.constant 0 : index
      %c0_33 = arith.constant 0 : index
      %48 = vector.load %arg7[%c0_32, %c0_33] : memref<16x8xf32, #tpu.memory_space<vmem>>, vector<16x8xf32>
      tpu.vector_store %arg7[%c0_32, %c0_33], %47 {strides = array<i32>} : memref<16x8xf32, #tpu.memory_space<vmem>>, vector<16x8xf32>,
    } else {
    }
    %c0 = arith.constant 0 : index
    %c0_1 = arith.constant 0 : index
    %3 = vector.load %arg2[%c0, %c0_1] : memref<16x8xf32, #tpu.memory_space<vmem>>, vector<16x8xf32>
    %c0_2 = arith.constant 0 : index
    %c0_3 = arith.constant 0 : index
    %c0_4 = arith.constant 0 : index
    %4 = vector.load %arg3[%c0_2, %c0_3, %c0_4] : memref<1x8x128xf32, #tpu.memory_space<vmem>>, vector<1x8x128xf32>
    %5 = vector.shape_cast %4 : vector<1x8x128xf32> to vector<8x128xf32>
    %cst = arith.constant dense<0.000000e+00> : vector<16x128xf32>
    %6 = tpu.matmul %3, %5, %cst {dimension_numbers = #tpu.dot_dimension_numbers<[1], [0], [0], [1], [0, 0, 1, 1], [], []>} : vector<16x8xf32>, vector<8x128xf32>, vector<16x128xf32> -> vector<16x128xf32>
    %cst_5 = arith.constant 0.353553385 : f32
    %7 = vector.broadcast %cst_5 : f32 to vector<16x128xf32>
    %8 = arith.mulf %6, %7 : vector<16x128xf32>
    %c128_i32 = arith.constant 128 : i32
    %9 = arith.muli %arg1, %c128_i32 : i32
    %10 = tpu.iota {dimensions = array<i32: 1>} : vector<16x128xi32>
    %11 = vector.broadcast %9 : i32 to vector<16x128xi32>
    %12 = arith.addi %11, %10 : vector<16x128xi32>
    %c208_i32 = arith.constant 208 : i32
    %13 = vector.broadcast %c208_i32 : i32 to vector<16x128xi32>
    %14 = arith.cmpi slt, %12, %13 : vector<16x128xi32>
    %cst_6 = arith.constant -1.000000e+30 : f32
    %15 = vector.broadcast %cst_6 : f32 to vector<16x128xf32>
    %16 = arith.select %14, %8, %15 : vector<16x128xi1>, vector<16x128xf32>
    %c0_7 = arith.constant 0 : index
    %c0_8 = arith.constant 0 : index
    %17 = vector.load %arg5[%c0_7, %c0_8] : memref<16x1xf32, #tpu.memory_space<vmem>>, vector<16x1xf32>
    %cst_9 = arith.constant dense<0xFF800000> : vector<16xf32>
    %18 = vector.multi_reduction <maximumf>, %16, %cst_9 [1] : vector<16x128xf32> to vector<16xf32>
    %19 = vector.shape_cast %18 : vector<16xf32> to vector<16x1xf32>
    %20 = arith.maximumf %17, %19 : vector<16x1xf32>
    %c0_10 = arith.constant 0 : index
    %c0_11 = arith.constant 0 : index
    %21 = vector.load %arg5[%c0_10, %c0_11] : memref<16x1xf32, #tpu.memory_space<vmem>>, vector<16x1xf32>
    %22 = arith.subf %21, %20 : vector<16x1xf32>
    %23 = math.exp %22 : vector<16x1xf32>
    %24 = vector.broadcast %20 : vector<16x1xf32> to vector<16x128xf32>
    %25 = arith.subf %16, %24 : vector<16x128xf32>
    %26 = math.exp %25 : vector<16x128xf32>
    %c0_12 = arith.constant 0 : index
    %c0_13 = arith.constant 0 : index
    %27 = vector.load %arg6[%c0_12, %c0_13] : memref<16x1xf32, #tpu.memory_space<vmem>>, vector<16x1xf32>
    %28 = arith.mulf %23, %27 : vector<16x1xf32>
    %cst_14 = arith.constant dense<0.000000e+00> : vector<16xf32>
    %29 = vector.multi_reduction <add>, %26, %cst_14 [1] : vector<16x128xf32> to vector<16xf32>
    %30 = vector.shape_cast %29 : vector<16xf32> to vector<16x1xf32>
    %31 = arith.addf %28, %30 : vector<16x1xf32>
    %c0_15 = arith.constant 0 : index
    %c0_16 = arith.constant 0 : index
    %32 = vector.load %arg6[%c0_15, %c0_16] : memref<16x1xf32, #tpu.memory_space<vmem>>, vector<16x1xf32>
    tpu.vector_store %arg6[%c0_15, %c0_16], %31 {strides = array<i32>} : memref<16x1xf32, #tpu.memory_space<vmem>>, vector<16x1xf32>,
    %cst_17 = arith.constant dense<0.000000e+00> : vector<16x8xf32>
    %33 = tpu.matmul %26, %5, %cst_17 {dimension_numbers = #tpu.dot_dimension_numbers<[1], [1], [0], [0], [0, 0, 1, 0], [], []>} : vector<16x128xf32>, vector<8x128xf32>, vector<16x8xf32> -> vector<16x8xf32>
    %c0_18 = arith.constant 0 : index
    %c0_19 = arith.constant 0 : index
    %34 = vector.load %arg7[%c0_18, %c0_19] : memref<16x8xf32, #tpu.memory_space<vmem>>, vector<16x8xf32>
    %35 = vector.broadcast %23 : vector<16x1xf32> to vector<16x8xf32>
    %36 = arith.mulf %35, %34 : vector<16x8xf32>
    %37 = arith.addf %36, %33 : vector<16x8xf32>
    %c0_20 = arith.constant 0 : index
    %c0_21 = arith.constant 0 : index
    %38 = vector.load %arg7[%c0_20, %c0_21] : memref<16x8xf32, #tpu.memory_space<vmem>>, vector<16x8xf32>
    tpu.vector_store %arg7[%c0_20, %c0_21], %37 {strides = array<i32>} : memref<16x8xf32, #tpu.memory_space<vmem>>, vector<16x8xf32>,
    %c0_22 = arith.constant 0 : index
    %c0_23 = arith.constant 0 : index
    %39 = vector.load %arg5[%c0_22, %c0_23] : memref<16x1xf32, #tpu.memory_space<vmem>>, vector<16x1xf32>
    tpu.vector_store %arg5[%c0_22, %c0_23], %20 {strides = array<i32>} : memref<16x1xf32, #tpu.memory_space<vmem>>, vector<16x1xf32>,
    %c1_i32 = arith.constant 1 : i32
    %40 = arith.cmpi eq, %arg1, %c1_i32 : i32
    %41 = arith.extui %40 : i1 to i32
    %c0_i32_24 = arith.constant 0 : i32
    %42 = arith.cmpi ne, %41, %c0_i32_24 : i32
    scf.if %42 {
      %c0_25 = arith.constant 0 : index
      %c0_26 = arith.constant 0 : index
      %43 = vector.load %arg7[%c0_25, %c0_26] : memref<16x8xf32, #tpu.memory_space<vmem>>, vector<16x8xf32>
      %c0_27 = arith.constant 0 : index
      %c0_28 = arith.constant 0 : index
      %44 = vector.load %arg6[%c0_27, %c0_28] : memref<16x1xf32, #tpu.memory_space<vmem>>, vector<16x1xf32>
      %45 = vector.broadcast %44 : vector<16x1xf32> to vector<16x8xf32>
      %46 = arith.divf %43, %45 : vector<16x8xf32>
      %c0_29 = arith.constant 0 : index
      %c0_30 = arith.constant 0 : index
      %c0_31 = arith.constant 0 : index
      %47 = vector.load %arg4[%c0_29, %c0_30, %c0_31] : memref<1x16x8xf32, #tpu.memory_space<vmem>>, vector<1x16x8xf32>
      %48 = vector.shape_cast %47 : vector<1x16x8xf32> to vector<16x8xf32>
      %49 = vector.shape_cast %46 : vector<16x8xf32> to vector<1x16x8xf32>
      tpu.vector_store %arg4[%c0_29, %c0_30, %c0_31], %49 {strides = array<i32>} : memref<1x16x8xf32, #tpu.memory_space<vmem>>, vector<1x16x8xf32>,
    } else {
    }
    return
  }
  func.func @transform_0(%arg0: i32, %arg1: i32) -> (i32, i32) {
    %c0_i32 = arith.constant 0 : i32
    %c0_i32_0 = arith.constant 0 : i32
    %c0_i32_1 = arith.constant 0 : i32
    return %c0_i32, %c0_i32_0 : i32, i32
  }
  func.func @transform_1(%arg0: i32, %arg1: i32) -> (i32, i32, i32) {
    %c0_i32 = arith.constant 0 : i32
    %c0_i32_0 = arith.constant 0 : i32
    return %arg0, %c0_i32, %arg1 : i32, i32, i32
  }
  func.func @transform_2(%arg0: i32, %arg1: i32) -> (i32, i32, i32) {
    %c0_i32 = arith.constant 0 : i32
    %c0_i32_0 = arith.constant 0 : i32
    %c0_i32_1 = arith.constant 0 : i32
    return %arg0, %c0_i32, %c0_i32_0 : i32, i32, i32
  }
}

</mosaic_0001>

<bundles_post_ra>
// kernel: tpu_custom_call.1
= control target key start
LH: loop header
LB: loop body
LE: loop exit
PB: predicated region body
PF: predicated region fallthrough
CT: control target
= control target key end

     0   :  { %7 = vsyncpa [#allocation6], 0  ;;  %s915_s0 = inlined_call_operand.vmem [shape: f32[16,8], index: 0, kind: input, shape index: {}]   ;;  %s916_s1 = inlined_call_operand.hbm [shape: f32[2,8,256], index: 1, kind: input, shape index: {}]   ;;  %s917_s2 = inlined_call_operand.vmem [shape: f32[2,16,8], index: 2, kind: output, shape index: {}]  }
   0x1   :  { %9 = vsyncpa [#allocation6 + $0x1], 0  ;;  %s767_s9 = smov 0   ;;  %s769_s10 = smov 0  }
   0x2   :  { %s771_s11 = smov 0   ;;  %s773_s12 = smov 0  }
   0x3   :  { %s775_s13 = smov 0   ;;  %s777_s14 = smov 0  }
   0x4   :  { %s779_s15 = smov 0   ;;  %s781_s16 = smov 0  }
   0x5 LB: > { %s526_s17 = sadd.s32 4294967295, %s745_s16   ;;  %s24_s18 = sadd.s32 1, %s737_s14  ;;  %s745_s16 = sphi %s781_s16, %s15_s16   ;;  %s741_s15 = sphi %s779_s15, %s927_s15   ;;  %s737_s14 = sphi %s777_s14, %s926_s14   ;;  %s733_s13 = sphi %s775_s13, %s925_s13   ;;  %s729_s12 = sphi %s773_s12, %s924_s12   ;;  %s725_s11 = sphi %s771_s11, %s923_s11   ;;  %s721_s10 = sphi %s769_s10, %s922_s10   ;;  %s717_s9 = sphi %s767_s9, %s921_s9  }
   0x6   : > { %p25_p0 = scmp.ge.s32.totalorder %s24_s18, 2  ;;  %s27_s19 = sadd.s32 1, %s741_s15 }
   0x7   : > { %s57_s20 = sadd.s32 1, %s725_s11  ;;  %p64_p1 = scmp.ne.s32.totalorder %s725_s11, %s721_s10 }
   0x8   : > { %s929_s18 = smov (%p25_p0, %s24_s18), 0  ;;  %s931_s19 = smov (!%p25_p0, %s27_s19), %s741_s15 }
   0x9   : > { %s53_s21 = ssub.s32 %s737_s14, %s929_s18  ;;  %p65_p2 = scmp.eq.s32.totalorder %s745_s16, 0 }
   0xa   : > { %p29_p3 = scmp.ge.s32.totalorder %s931_s19, 2  ;;  %p70_p4 = scmp.ne.s32.totalorder %s721_s10, %s717_s9 }
   0xb   : > { %p818_p5 = por %p65_p2, %p64_p1  ;;  %p71_p6 = scmp.eq.s32.totalorder %s526_s17, 0 }
   0xc   : > { %s933_s19 = smov (%p29_p3, %s931_s19), 0  ;;  %p567_p8 = scmp.lt.s32.totalorder %s745_s16, 4 }
   0xd   : > { %p824_p7 = por %p71_p6, %p70_p4  ;;  %s52_s24 = ssub.s32 %s741_s15, %s933_s19 }
   0xe   : > { %s54_s25 = sor.u32 %s53_s21, %s52_s24  ;;  %s123_s26 = sand.u32 1, %s725_s11  }
   0xf   : > { %p55_p9 = scmp.eq.s32.totalorder %s54_s25, 0  ;;  %s530_s27 = sshll.u32 %s123_s26, 3 }
  0x10   : > { %s531_s28 = sshll.u32 %s741_s15, 1  ;;  %s127_s4 = scalar_lea.vmem [#allocation5], %s530_s27 }
  0x11   : > { %s834_s29 = scalar_select %p55_p9, %s725_s11, %s57_s20  }
  0x12   : > { %s132_s30 = sadd.s32 %s737_s14, %s531_s28  ;;  %s136_s5 = sshll.u32 %s127_s4, 4  ;;  %s137_s5 = int_to_ptr.vmem [resolvable:$true] %s136_s5 }
  0x13   : > { %s532_s3 = sshll.u32 %s132_s30, 7  ;;  %p844_p10 = pnand %p567_p8, %p818_p5 }
  0x14   : > { %s134_s8 = scalar_lea.hbm %s916_s1, %s532_s3  ;;  %p533_p11 = scmp.ge.s32.totalorder %s745_s16, 1 }
  0x15   : > { %p141_p12 = scmp.lt.s32.totalorder %s745_s16, 5  ;;  %s124_s17 = scalar_lea.sflag [#allocation6], %s123_s26 }
  0x16   : > { %p653_p13 = pneg %p844_p10  ;;  %s664_s20 = scalar_lea.vmem %s137_s5, 128 }
  0x17   : > { %p665_p0 = scmp.ne.s32.totalorder %s137_s5, %s664_s20  ;;  %s747_s21 = smov [#allocation5]  }
  0x18   : > { %s669_s24 = sshll.u32 %s747_s21, 4  ;;  %s670_s24 = int_to_ptr.vmem [resolvable:$false] %s669_s24 }
  0x19   : > { %p667_p1 = pnand %p665_p0, %p653_p13  ;;  %s671_s25 = scalar_lea.vmem %s670_s24, 256 }
  0x1a   : > { %p672_p3 = scmp.lt.s32.totalorder %s137_s5, %s670_s24  ;;  %p673_p4 = scmp.lt.s32.totalorder %s671_s25, %s664_s20 }
  0x1b   : > { %p668_p2 = pneg %p667_p1 }
  0x1c   : > { %p674_p5 = por %p673_p4, %p672_p3 }
  0x1e   : > { %p675_p6 = pnand %p674_p5, %p668_p2 }
  0x20   : > { %678 = shalt.err (!%p675_p6)
}
  0x21   : > { %566 = dma.hbm_to_vmem [thread:$0]  (!%p844_p10), %s134_s8, 128, %s137_s5, %s124_s17  }
  0x22   : > { %p142_p8 = pnand %p533_p11, %p141_p12 }
  0x23   : > { %s147_s22 = sand.u32 (!%p142_p8), 1, %s721_s10  }
  0x24   : > { %145 = sbr.rel (%p142_p8) target bundleno = 885 (0x375), region = 28  ;;  %s534_s26 = sshll.u32 (!%p142_p8), %s147_s22, 3 }
  0x25   : > { %s148_s27 = scalar_lea.sflag (!%p142_p8), [#allocation6], %s147_s22  ;;  %s151_s28 = scalar_lea.vmem (!%p142_p8), [#allocation5], %s534_s26 }
  0x29   : > { %712 = dma.done.wait (%p824_p7), %s148_s27, 128  }
  0x2a   : > { %714 = vsyncadd (%p824_p7), %s148_s27, 4294967168  ;;  %p172_p9 = scmp.lt.s32.totalorder %s733_s13, 1  ;;  %p537_p10 = scmp.ne.s32.totalorder %s729_s12, 0 }
  0x2c   : > { %s935_s13 = smov (!%p172_p9, %s733_s13), 1  ;;  %180 = sbr.rel (%p537_p10) target bundleno = 53 (0x35), region = 36 }
  0x2d   : > { %s544_s30 = sshll.u32 %s935_s13, 4 }
  0x2e   : > { %s868_s5 = scalar_lea.vmem %s917_s2, %s544_s30 }
  0x31   : > { %vm181_vm0 = vcmask 7168   ;;  %vm186_vm1 = vcmask 64512   ;;  %v748_v0 = vmov -inf   ;;  %v749_v1 = vmov 0.0  }
  0x32   : > { %182 = vst.msk [vmem:[#allocation2] sm:$0xff] %vm181_vm0, %v748_v0  ;;  %183 = vst.msk [vmem:[#allocation2 + $0x8] sm:$0xff] %vm181_vm0, %v748_v0 }
  0x33   : > { %184 = vst.msk [vmem:[#allocation3] sm:$0xff] %vm181_vm0, %v749_v1  ;;  %185 = vst.msk [vmem:[#allocation3 + $0x8] sm:$0xff] %vm181_vm0, %v749_v1 }
  0x34   : > { %187 = vst.msk [vmem:[#allocation4] sm:$0xff] %vm186_vm1, %v749_v1  ;;  %188 = vst.msk [vmem:[#allocation4 + $0x8] sm:$0xff] %vm186_vm1, %v749_v1 }
  0x35 PF: > { %v191_v2 = vld [vmem:[%s151_s28] sm:$0xff]  ;;  %v189_v3 = vld [vmem:[%s915_s0] sm:$0xff]  ;;  %vm192_vm2 = vcmask 64512   ;;  %v190_v4 = vld [vmem:[%s915_s0 + $0x8] sm:$0xff]  ;;  %v277_v5 = vlaneseq  ;;  %s540_s8 = sshll.u32 %s729_s12, 7  ;;  %v750_v15 = vmov 0  }
  0x36   : > { %551 = vmatprep.subr.mxu0 %v191_v2  ;;  %553 = vmatprep.mubr.msk.f32.mxu0 %vm192_vm2, %v189_v3  ;;  %v279_v7 = vstv %s540_s8  ;;  %vm324_vm4 = vcmask 7168   ;;  %p541_p7 = scmp.ne.s32.totalorder %s729_s12, 1 }
  0x37   : > { %552 = vmatpush3.msra.mxu0 %v191_v2  ;;  %556 = vmatprep.subr.mxu1 %v191_v2  ;;  %v278_v6 = vand.u32 127, %v277_v5 }
  0x38   : > { %554 = vmatmul.mubr.msk.f32.vlgmr.msra.gmra.mxu0 %vm192_vm2, %v190_v4  ;;  %557 = vmatpush3.xpose.msra.mxu1 %v191_v2 }
  0x39   : > { %v280_v9 = vadd.s32 %v279_v7, %v278_v6  ;;  %636 = vset.pattern.permute.xlu1 %v750_v15  ;;  %637 = vset.pattern.permute.xlu0 %v750_v15  ;;  %v284_v16 = vld [vmem:[#allocation2] sm:$0xff]  ;;  %v285_v19 = vld [vmem:[#allocation2 + $0x8] sm:$0xff] }
  0x3a   : > { %v314_v36 = vld [vmem:[#allocation3] sm:$0xff]  ;;  %v315_v39 = vld [vmem:[#allocation3 + $0x8] sm:$0xff] }
  0x3b   : > { %vm281_vm3 = vcmp.lt.s32.totalorder %v280_v9, 208  ;;  %v403_v44 = vld [vmem:[#allocation4 + $0x8] sm:$0xff]  ;;  %v402_v46 = vld [vmem:[#allocation4] sm:$0xff] }
  0xf8   : > { %v555_v8 = vpop.f32.mrf.mxu0 }
  0xf9   : > { %v275_v12 = vmul.f32 0.35355338, %v555_v8 }
  0xfa   : > { %v265_v10 = vpop.f32.mrf.mxu0 }
  0xfb   : > { %v274_v11 = vmul.f32 0.35355338, %v265_v10  ;;  %v283_v14 = vsel %vm281_vm3, %v275_v12, -1e+30 }
  0xfd   : > { %v282_v13 = vsel %vm281_vm3, %v274_v11, -1e+30 }
  0xfe   : > { %286 = vmax.xlane.f32.xlu0 %v282_v13 }
 0x102   : > { %288 = vmax.xlane.f32.xlu0 %v283_v14 }
 0x187   : > { %v287_v17 = vpop.xlane.xlu0 %286 }
 0x188   : > { %v290_v18 = vmax.f32 %v284_v16, %v287_v17 }
 0x18a   : > { %v292_v20 = vsub.f32 %v284_v16, %v290_v18  ;;  %420 = vst.msk [vmem:[#allocation2] sm:$0xff] %vm324_vm4, %v290_v18  ;;  %300 = vperm.xlu1 %636, %v290_v18  }
 0x18b   : > { %v289_v21 = vpop.xlane.xlu0 %288 }
 0x18c   : > { %v291_v22 = vmax.f32 %v285_v19, %v289_v21  ;;  %v294_v33 = vmul.f32 1.442695, %v292_v20 }
 0x18e   : > { %v293_v23 = vsub.f32 %v285_v19, %v291_v22  ;;  %421 = vst.msk [vmem:[#allocation2 + $0x8] sm:$0xff] %vm324_vm4, %v291_v22  ;;  %305 = vperm.xlu1 %636, %v291_v22  }
 0x190   : > { %v296_v32 = vmul.f32 1.442695, %v293_v23 }
 0x205   : > { %v301_v24 = vpop.permute.xlu1 %300 }
 0x206   : > { %v308_v25 = vsub.f32 %v282_v13, %v301_v24 }
 0x208   : > { %v310_v26 = vmul.f32 1.442695, %v308_v25 }
 0x209   : > { %v306_v27 = vpop.permute.xlu1 %305 }
 0x20a   : > { %638 = vpow2.f32 %v310_v26  ;;  %v309_v28 = vsub.f32 %v283_v14, %v306_v27 }
 0x20c   : > { %v312_v29 = vmul.f32 1.442695, %v309_v28 }
 0x20e   : > { %640 = vpow2.f32 %v312_v29 }
 0x20f   : > { %642 = vpow2.f32 %v296_v32 }
 0x210   : > { %644 = vpow2.f32 %v294_v33 }
 0x217   : > { %v639_v30 = vpop.eup %638 }
 0x218   : > { %318 = vadd.xlane.f32.xlu0 %v639_v30  ;;  %558 = vmatprep.mubr.f32.mxu1 %v639_v30 }
 0x21b   : > { %v641_v31 = vpop.eup %640 }
 0x21c   : > { %320 = vadd.xlane.f32.xlu1 %v641_v31  ;;  %559 = vmatmul.mubr.f32.vlgmr.msra.gmra.mxu1 %v641_v31  ;;  %v643_v34 = vpop.eup %642 }
 0x21d   : > { %v645_v35 = vpop.eup %644  ;;  %v317_v41 = vmul.f32 %v643_v34, %v315_v39 }
 0x21e   : > { %v316_v37 = vmul.f32 %v645_v35, %v314_v36 }
 0x22d   : > { %411 = vperm.xlu1 %636, %v643_v34  }
 0x22e   : > { %406 = vperm.xlu0 %637, %v645_v35  }
 0x2a1   : > { %v319_v38 = vpop.xlane.xlu0 %318 }
 0x2a2   : > { %v322_v40 = vadd.f32 %v319_v38, %v316_v37 }
 0x2a4   : > { %325 = vst.msk [vmem:[#allocation3] sm:$0xff] %vm324_vm4, %v322_v40 }
 0x2a5   : > { %v321_v42 = vpop.xlane.xlu1 %320 }
 0x2a6   : > { %v323_v43 = vadd.f32 %v321_v42, %v317_v41 }
 0x2a8   : > { %326 = vst.msk [vmem:[#allocation3 + $0x8] sm:$0xff] %vm324_vm4, %v323_v43 }
 0x2a9   : > { %v412_v45 = vpop.permute.xlu1 %411  ;;  %v407_v47 = vpop.permute.xlu0 %406 }
 0x2aa   : > { %v415_v48 = vmul.f32 %v412_v45, %v403_v44  ;;  %v414_v50 = vmul.f32 %v407_v47, %v402_v46 }
 0x2dc   : > { %v560_v49 = vpop.f32.mrf.mxu1 }
 0x2dd   : > { %v417_v51 = vadd.f32 %v560_v49, %v415_v48  ;;  %425 = sbr.rel (%p541_p7) target bundleno = 885 (0x375), region = 40 }
 0x2de   : > { %v393_v52 = vpop.f32.mrf.mxu1 }
 0x2df   : > { %419 = vst.msk [vmem:[#allocation4 + $0x8] sm:$0xff] %vm192_vm2, %v417_v51  ;;  %v416_v53 = vadd.f32 %v414_v50, %v393_v52 }
 0x2e1   : > { %418 = vst.msk [vmem:[#allocation4] sm:$0xff] %vm192_vm2, %v416_v53 }
 0x2e2   : > { %v428_v54 = vld [vmem:[#allocation3] sm:$0xff]  ;;  %v751_v55 = vmov 0   ;;  %v429_v56 = vld [vmem:[#allocation3 + $0x8] sm:$0xff] }
 0x2e3   : > { %646 = vset.pattern.permute.xlu0 %v751_v55 }
 0x2e4   : > { %432 = vperm.xlu0 %646, %v428_v54  }
 0x2e6   : > { %v427_v62 = vld [vmem:[#allocation4 + $0x8] sm:$0xff] }
 0x2e8   : > { %437 = vperm.xlu0 %646, %v429_v56   ;;  %v426_v59 = vld [vmem:[#allocation4] sm:$0xff] }
 0x35f   : > { %v433_v57 = vpop.permute.xlu0 %432 }
 0x360   : > { %647 = vrcp.f32 %v433_v57 }
 0x363   : > { %v438_v58 = vpop.permute.xlu0 %437 }
 0x364   : > { %649 = vrcp.f32 %v438_v58 }
 0x36d   : > { %v648_v60 = vpop.eup %647 }
 0x36e   : > { %v441_v61 = vmul.f32 %v648_v60, %v426_v59 }
 0x370   : > { %444 = vst.msk [vmem:[%s868_s5] sm:$0xff] %vm192_vm2, %v441_v61 }
 0x371   : > { %v650_v63 = vpop.eup %649 }
 0x372   : > { %v443_v0 = vmul.f32 %v650_v63, %v427_v62 }
 0x374   : > { %445 = vst.msk [vmem:[%s868_s5 + $0x8] sm:$0xff] %vm192_vm2, %v443_v0 }
 0x375 PF: > { %s15_s16 = sadd.s32 1, %s745_s16   ;;  %s921_s9 = smov %s721_s10 }
 0x376   : > { %p12_p11 = scmp.ge.s32.totalorder %s15_s16, 6   ;;  %s922_s10 = smov %s725_s11 }
 0x377   : > { %s923_s11 = smov %s834_s29  ;;  %s924_s12 = smov %s737_s14 }
 0x378   : > { %s925_s13 = smov %s741_s15  ;;  %s926_s14 = smov %s929_s18 }
 0x379   : > { %s927_s15 = smov %s933_s19  ;;  %14 = sbr.rel (!%p12_p11) target bundleno = 5 (0x5), region = 76 }
 0x37e   :  { %467 = vsyncpa [#allocation6], 1 }
 0x37f   :  { %469 = vsyncpa [#allocation6 + $0x1], 1 }

</bundles_post_ra>
